<compile_context>
chip_gen: v7x
topology: tpu7x:2x2x1
jax: 0.10.0
libtpu: 0.0.40
codegen_flags: <defaults>
</compile_context>

<pallas_src>
import math
import jax
import jax.numpy as jnp
from jax.experimental import pallas as pl
from jax.experimental.pallas import tpu as pltpu


def _conv1x1_kernel(w_ref, b_ref, x_ref, o_ref):
    # w_ref: (C_out, C_in), b_ref: (C_out, 1),
    # x_ref: (C_in, TP) pixel tile, o_ref: (C_out, TP)
    acc = jnp.dot(w_ref[...], x_ref[...], preferred_element_type=jnp.float32)
    o_ref[...] = (acc + b_ref[...]).astype(o_ref.dtype)


def _round_up(x, m):
    return ((x + m - 1) // m) * m


def _pick_pixel_tile(HW, N, pixel_tile):
    """Pick the pixel-axis (lane) tile.

    Rules (perf review):
      * tile is a multiple of 128 or equals HW (layout rule),
      * prefer a tile that divides HW exactly (no ragged masked-store tail),
      * keep >= 2 total grid steps so both v7x TensorCores get work,
      * large tiles amortize the ~0.35 us fixed per-step overhead.
    """
    if HW <= pixel_tile:
        tp = HW
        # Single image + single block would idle one v7x TensorCore: split
        # into two 128-aligned blocks when the image is big enough.
        if N == 1 and HW >= 256:
            tp = _round_up(pl.cdiv(HW, 2), 128)
        return tp
    base = max((pixel_tile // 128) * 128, 128)
    # Prefer a 128-multiple divisor of HW close to the requested tile.
    lo = max(base // 2, 128)
    tp = base
    while tp >= lo:
        if HW % tp == 0:
            return tp
        tp -= 128
    return base  # ragged last block handled by Pallas


def instance_segmentation_head(y_nchw, weight, bias, *, pixel_tile=16384):
    """1x1 conv head.

    y_nchw: (N, C_in, H, W); weight: (C_out, C_in); bias: (C_out,).
    Returns (N, C_out, H, W), matching nn.Conv2d(in, out, 1, 1, 0).
    """
    N, C_in, H, W = y_nchw.shape
    C_out = weight.shape[0]
    HW = H * W

    # Free reshape: last two dims of NCHW are contiguous.
    x = y_nchw.reshape(N, C_in, HW)
    b = bias.reshape(C_out, 1)  # broadcast along lane (pixel) axis in-kernel

    tp = _pick_pixel_tile(HW, N, pixel_tile)
    grid_t = pl.cdiv(HW, tp)

    itemsize = jnp.dtype(y_nchw.dtype).itemsize
    w_itemsize = jnp.dtype(weight.dtype).itemsize

    # VMEM budget: double-buffered x/out blocks + f32 accumulator temp +
    # resident weight/bias.  Cap at 48 MiB (safe on v7x's 64 MiB physical,
    # well above v5e's 16 MiB scoped default).
    vmem_need = (2 * (C_in + C_out) * tp * itemsize      # double-buffered in/out
                 + C_out * tp * 4                        # f32 acc temporary
                 + (C_out * C_in + C_out) * w_itemsize)  # resident weight/bias
    vmem_limit = int(min(max(vmem_need + (4 << 20), 32 << 20), 48 << 20))

    cost = pl.CostEstimate(
        flops=2 * N * HW * C_out * C_in,
        bytes_accessed=(N * HW * (C_in + C_out) * itemsize
                        + (C_out * C_in + C_out) * w_itemsize),
        transcendentals=0,
    )

    out = pl.pallas_call(
        _conv1x1_kernel,
        out_shape=jax.ShapeDtypeStruct((N, C_out, HW), y_nchw.dtype),
        grid_spec=pltpu.PrefetchScalarGridSpec(
            num_scalar_prefetch=0,
            grid=(N, grid_t),
            in_specs=[
                pl.BlockSpec((C_out, C_in), lambda n, t: (0, 0)),   # weight (resident)
                pl.BlockSpec((C_out, 1), lambda n, t: (0, 0)),      # bias   (resident)
                pl.BlockSpec((None, C_in, tp), lambda n, t: (n, 0, t)),  # pixels
            ],
            out_specs=pl.BlockSpec((None, C_out, tp), lambda n, t: (n, 0, t)),
        ),
        compiler_params=pltpu.CompilerParams(
            dimension_semantics=("parallel", "parallel"),
            vmem_limit_bytes=vmem_limit),
        cost_estimate=cost,
    )(weight, b, x)

    # Free reshape back to NCHW.
    return out.reshape(N, C_out, H, W)


def init_params(key, in_chans=54, out_chans=36, dtype=jnp.float32):
    """Deterministic init matching nn.Conv2d default (kaiming-uniform-ish) shapes."""
    kw, kb = jax.random.split(key)
    fan_in = in_chans * 1 * 1
    bound = 1.0 / math.sqrt(fan_in)
    # Conv2d weight shape is (out, in, 1, 1); we keep the squeezed (out, in) form.
    weight = jax.random.uniform(kw, (out_chans, in_chans), dtype, -bound, bound)
    bias = jax.random.uniform(kb, (out_chans,), dtype, -bound, bound)
    return weight, bias


if __name__ == "__main__":
    key = jax.random.PRNGKey(0)
    k_x, k_p = jax.random.split(key)

    in_chans, out_chans = 54, 36
    N, H, W = 2, 16, 16

    x = jax.random.normal(k_x, (N, in_chans, H, W), jnp.float32)
    weight, bias = init_params(k_p, in_chans, out_chans)

    out = instance_segmentation_head(x, weight, bias)
    out = jax.block_until_ready(out)

    # Reference check against plain JAX (same math as the 1x1 conv).
    ref = jnp.einsum("nchw,oc->nohw", x, weight) + bias[None, :, None, None]
    assert out.shape == (N, out_chans, H, W)
    assert jnp.allclose(out, ref, atol=1e-5, rtol=1e-5)

    print("KERNEL_OK")
</pallas_src>

<mosaic_0001>
module attributes {stable_mosaic.version = 11 : i64} {
  func.func @_conv1x1_kernel(%arg0: i32, %arg1: i32, %arg2: memref<36x54xf32, #tpu.memory_space<vmem>>, %arg3: memref<36x1xf32, #tpu.memory_space<vmem>>, %arg4: memref<1x54x256xf32, #tpu.memory_space<vmem>>, %arg5: memref<1x36x256xf32, #tpu.memory_space<vmem>>) attributes {dimension_semantics = [#tpu.dimension_semantics<parallel>, #tpu.dimension_semantics<parallel>], iteration_bounds = array<i64: 2, 1>, scalar_prefetch = 0 : i64, scratch_operands = 0 : i64, tpu.core_type = #tpu.core_type<tc>, window_params = [{pipeline_mode = #tpu.pipeline_mode<synchronous>, transform_indices = @transform_0, window_bounds = array<i64: 36, 54>}, {pipeline_mode = #tpu.pipeline_mode<synchronous>, transform_indices = @transform_1, window_bounds = array<i64: 36, 1>}, {transform_indices = @transform_2, window_bounds = array<i64: 1, 54, 256>}, {transform_indices = @transform_3, window_bounds = array<i64: 1, 36, 256>}]} {
    %c0 = arith.constant 0 : index
    %c0_0 = arith.constant 0 : index
    %0 = vector.load %arg2[%c0, %c0_0] : memref<36x54xf32, #tpu.memory_space<vmem>>, vector<36x54xf32>
    %c0_1 = arith.constant 0 : index
    %c0_2 = arith.constant 0 : index
    %c0_3 = arith.constant 0 : index
    %1 = vector.load %arg4[%c0_1, %c0_2, %c0_3] : memref<1x54x256xf32, #tpu.memory_space<vmem>>, vector<1x54x256xf32>
    %2 = vector.shape_cast %1 : vector<1x54x256xf32> to vector<54x256xf32>
    %cst = arith.constant dense<0.000000e+00> : vector<36x256xf32>
    %3 = tpu.matmul %0, %2, %cst {dimension_numbers = #tpu.dot_dimension_numbers<[1], [0], [0], [1], [0, 0, 1, 1], [], []>} : vector<36x54xf32>, vector<54x256xf32>, vector<36x256xf32> -> vector<36x256xf32>
    %c0_4 = arith.constant 0 : index
    %c0_5 = arith.constant 0 : index
    %4 = vector.load %arg3[%c0_4, %c0_5] : memref<36x1xf32, #tpu.memory_space<vmem>>, vector<36x1xf32>
    %5 = vector.broadcast %4 : vector<36x1xf32> to vector<36x256xf32>
    %6 = arith.addf %3, %5 : vector<36x256xf32>
    %c0_6 = arith.constant 0 : index
    %c0_7 = arith.constant 0 : index
    %c0_8 = arith.constant 0 : index
    %7 = vector.load %arg5[%c0_6, %c0_7, %c0_8] : memref<1x36x256xf32, #tpu.memory_space<vmem>>, vector<1x36x256xf32>
    %8 = vector.shape_cast %7 : vector<1x36x256xf32> to vector<36x256xf32>
    %9 = vector.shape_cast %6 : vector<36x256xf32> to vector<1x36x256xf32>
    tpu.vector_store %arg5[%c0_6, %c0_7, %c0_8], %9 {strides = array<i32>} : memref<1x36x256xf32, #tpu.memory_space<vmem>>, vector<1x36x256xf32>,
    return
  }
  func.func @transform_0(%arg0: i32, %arg1: i32) -> (i32, i32) {
    %c0_i32 = arith.constant 0 : i32
    %c0_i32_0 = arith.constant 0 : i32
    %c0_i32_1 = arith.constant 0 : i32
    return %c0_i32, %c0_i32_0 : i32, i32
  }
  func.func @transform_1(%arg0: i32, %arg1: i32) -> (i32, i32) {
    %c0_i32 = arith.constant 0 : i32
    %c0_i32_0 = arith.constant 0 : i32
    %c0_i32_1 = arith.constant 0 : i32
    return %c0_i32, %c0_i32_0 : i32, i32
  }
  func.func @transform_2(%arg0: i32, %arg1: i32) -> (i32, i32, i32) {
    %c0_i32 = arith.constant 0 : i32
    %c0_i32_0 = arith.constant 0 : i32
    return %arg0, %c0_i32, %arg1 : i32, i32, i32
  }
  func.func @transform_3(%arg0: i32, %arg1: i32) -> (i32, i32, i32) {
    %c0_i32 = arith.constant 0 : i32
    %c0_i32_0 = arith.constant 0 : i32
    return %arg0, %c0_i32, %arg1 : i32, i32, i32
  }
}

</mosaic_0001>

<bundles_post_ra>
// kernel: tpu_custom_call.1
= control target key start
LH: loop header
LB: loop body
LE: loop exit
PB: predicated region body
PF: predicated region fallthrough
CT: control target
= control target key end

     0   :  { %s586_s12 = smov 0   ;;  %s588_s13 = smov 0   ;;  %s686_s0 = inlined_call_operand.vmem [shape: f32[36,54], index: 0, kind: input, shape index: {}]   ;;  %s687_s1 = inlined_call_operand.vmem [shape: f32[36,1], index: 1, kind: input, shape index: {}]   ;;  %s688_s2 = inlined_call_operand.vmem [shape: f32[2,54,256], index: 2, kind: input, shape index: {}]   ;;  %s689_s3 = inlined_call_operand.vmem [shape: f32[2,36,256], index: 3, kind: output, shape index: {}]  }
   0x1   :  { %s590_s14 = smov 0  }
   0x2 LB: > { %s25_s15 = sadd.s32 1, %s558_s13  ;;  %p478_p0 = scmp.ge.s32.totalorder %s562_s14, 1  ;;  %s562_s14 = sphi %s590_s14, %s13_s14   ;;  %s558_s13 = sphi %s588_s13, %s691_s13   ;;  %s554_s12 = sphi %s586_s12, %s690_s12  }
   0x3   : > { %p27_p1 = scmp.ge.s32.totalorder %s25_s15, 2  ;;  %p158_p2 = scmp.lt.s32.totalorder %s562_s14, 3 }
   0x5   : > { %s693_s15 = smov (%p27_p1, %s25_s15), 0  ;;  %p159_p3 = pnand %p478_p0, %p158_p2 }
   0x6   : > { %p191_p4 = scmp.lt.s32.totalorder (!%p159_p3), %s554_s12, 1  ;;  %v564_v0 = vmov (!%p159_p3), 0.0   ;;  %v565_v1 = vmov (!%p159_p3), 0   ;;  %v229_v2 = vld [vmem:[%s687_s1] sm:$0xff] (!%p159_p3)  ;;  %v231_v3 = vld [vmem:[%s687_s1 + $0x10] sm:$0xff] (!%p159_p3)  ;;  %v230_v4 = vld [vmem:[%s687_s1 + $0x8] sm:$0xff] (!%p159_p3) }
   0x7   : > { %162 = sbr.rel (%p159_p3) target bundleno = 259 (0x103), region = 32  ;;  %346 = vmatprep.mubr.f32.mxu0 (!%p159_p3), %v564_v0  ;;  %364 = vmatprep.mubr.f32.mxu1 (!%p159_p3), %v564_v0  ;;  %v232_v5 = vld [vmem:[%s687_s1 + $0x18] sm:$0xff] (!%p159_p3)  ;;  %v233_v19 = vld [vmem:[%s687_s1 + $0x20] sm:$0xf] (!%p159_p3)  ;;  %vm275_vm0 = vcmask (!%p159_p3), 1045504   ;;  %vm259_vm1 = vcmask (!%p159_p3), 441344  }
   0x8   : > { %538 = vset.pattern.permute.xlu0 (!%p159_p3), %v565_v1  ;;  %539 = vset.pattern.permute.xlu1 (!%p159_p3), %v565_v1  ;;  %v210_v27 = vld [vmem:[%s686_s0] sm:$0xff] (!%p159_p3)  ;;  %v213_v28 = vld [vmem:[%s686_s0 + $0x18] sm:$0xff] (!%p159_p3)  ;;  %v211_v29 = vld [vmem:[%s686_s0 + $0x8] sm:$0xff] (!%p159_p3) }
   0x9   : > { %236 = vperm.xlu0 (!%p159_p3), %538, %v229_v2   ;;  %246 = vperm.xlu1 (!%p159_p3), %539, %v231_v3   ;;  %v214_v30 = vld [vmem:[%s686_s0 + $0x20] sm:$0xf] (!%p159_p3)  ;;  %v212_v31 = vld [vmem:[%s686_s0 + $0x10] sm:$0xff] (!%p159_p3) }
   0xd   : > { %241 = vperm.xlu0 (!%p159_p3), %538, %v230_v4   ;;  %251 = vperm.xlu1 (!%p159_p3), %539, %v232_v5  }
   0xe   : > { %s695_s12 = smov (!%p191_p4, %s554_s12), 1 }
   0xf   : > { %s510_s20 = smul.u32 112, %s695_s12 }
  0x10   : > { %s511_s17 = smul.u32 80, %s695_s12 }
  0x11   : > { %s624_s27 = scalar_lea.vmem %s688_s2, %s510_s20  ;;  %256 = vperm.xlu0 %538, %v233_v19  }
  0x12   : > { %v216_v6 = vld [vmem:[%s624_s27 + $0x8] sm:$0xff]  ;;  %v218_v7 = vld [vmem:[%s624_s27 + $0x18] sm:$0xff]  ;;  %v215_v8 = vld [vmem:[%s624_s27] sm:$0xff]  ;;  %s665_s20 = scalar_lea.vmem %s689_s3, %s511_s17 }
  0x13   : > { %v490_v9 = vpack.c.bf16 %v218_v7, %v216_v6  ;;  %v217_v10 = vld [vmem:[%s624_s27 + $0x10] sm:$0xff]  ;;  %v220_v11 = vld [vmem:[%s624_s27 + $0x28] sm:$0xff]  ;;  %v222_v12 = vld [vmem:[%s624_s27 + $0x38] sm:$0xff] }
  0x14   : > { %v492_v13 = vpack.c.bf16 %v217_v10, %v215_v8  ;;  %v494_v14 = vpack.c.bf16 %v222_v12, %v220_v11  ;;  %v219_v15 = vld [vmem:[%s624_s27 + $0x20] sm:$0xff]  ;;  %v221_v16 = vld [vmem:[%s624_s27 + $0x30] sm:$0xff]  ;;  %v224_v17 = vld [vmem:[%s624_s27 + $0x48] sm:$0xff] }
  0x15   : > { %491 = vmatprep.subr.bf16.mxu0 %v490_v9  ;;  %502 = vmatprep.subr.bf16.mxu1 %v490_v9  ;;  %v226_v18 = vld [vmem:[%s624_s27 + $0x58] sm:$0xff]  ;;  %v496_v20 = vpack.c.bf16 %v221_v16, %v219_v15  ;;  %v223_v22 = vld [vmem:[%s624_s27 + $0x40] sm:$0xff]  ;;  %v225_v23 = vld [vmem:[%s624_s27 + $0x50] sm:$0xff] }
  0x16   : > { %493 = vmatpush1.bf16.msra.mxu0 %v492_v13  ;;  %506 = vmatpush1.bf16.msra.mxu1 %v492_v13  ;;  %v498_v21 = vpack.c.bf16 %v226_v18, %v224_v17  ;;  %v500_v24 = vpack.c.bf16 %v225_v23, %v223_v22  ;;  %v228_v25 = vld [vmem:[%s624_s27 + $0x68] sm:$0x3f]  ;;  %v227_v26 = vld [vmem:[%s624_s27 + $0x60] sm:$0x3f] }
  0x17   : > { %495 = vmatprep.subr.bf16.mxu0 %v494_v14  ;;  %503 = vmatprep.subr.bf16.mxu1 %v494_v14 }
  0x1a   : > { %497 = vmatpush1.bf16.msra.mxu0 %v496_v20  ;;  %507 = vmatpush1.bf16.msra.mxu1 %v496_v20 }
  0x1b   : > { %499 = vmatprep.subr.bf16.mxu0 %v498_v21  ;;  %504 = vmatprep.subr.bf16.mxu1 %v498_v21 }
  0x1e   : > { %501 = vmatpush1.bf16.msra.mxu0 %v500_v24  ;;  %508 = vmatpush1.bf16.msra.mxu1 %v500_v24 }
  0x1f   : > { %481 = vmatprep.subr.msk.mxu0 %vm275_vm0, %v228_v25  ;;  %505 = vmatprep.subr.msk.mxu1 %vm275_vm0, %v228_v25 }
  0x22   : > { %482 = vmatpush1.msk.msra.mxu0 %vm275_vm0, %v227_v26  ;;  %509 = vmatpush1.msk.msra.mxu1 %vm275_vm0, %v227_v26 }
  0x23   : > { %483 = vmatmul.mubr.msk.f32.vlgmr.msra.gmra.mrb[0].mxu0 %vm259_vm1, %v210_v27  ;;  %486 = vmatmul.mubr.msk.f32.vlgmr.msra.gmra.mrb[0].mxu1 %vm259_vm1, %v213_v28 }
  0x24   : > { %352 = vmatprep.mubr.f32.mxu0 %v564_v0  ;;  %370 = vmatprep.mubr.f32.mxu1 %v564_v0 }
  0x27   : > { %484 = vmatmul.mubr.msk.f32.gmra.mrb[2].mxu0 %vm259_vm1, %v211_v29  ;;  %487 = vmatmul.mubr.msk.f32.gmra.mrb[2].mxu1 %vm259_vm1, %v214_v30 }
  0x28   : > { %358 = vmatprep.mubr.f32.mxu0 %v564_v0 }
  0x2b   : > { %485 = vmatmul.mubr.msk.f32.gmra.mrb[4].mxu0 %vm259_vm1, %v212_v31 }
  0x88   : > { %v237_v32 = vpop.permute.xlu0 %236  ;;  %v247_v33 = vpop.permute.xlu1 %246 }
  0x8c   : > { %v242_v34 = vpop.permute.xlu0 %241  ;;  %v252_v35 = vpop.permute.xlu1 %251 }
  0x90   : > { %v257_v44 = vpop.permute.xlu0 %256 }
  0xf6   : > { %v348_v36 = vpop.f32.mrb[0].mxu0  ;;  %v366_v37 = vpop.f32.mrb[0].mxu1 }
  0xf7   : > { %v349_v38 = vadd.f32 %v348_v36, %v237_v32  ;;  %v350_v39 = vpop.f32.mrb[1].mxu0  ;;  %v368_v40 = vpop.f32.mrb[1].mxu1  ;;  %v367_v41 = vadd.f32 %v366_v37, %v252_v35 }
  0xf8   : > { %v351_v42 = vadd.f32 %v350_v39, %v237_v32  ;;  %v369_v43 = vadd.f32 %v368_v40, %v252_v35 }
  0xf9   : > { %377 = vst [vmem:[%s665_s20] sm:$0xff] %v349_v38  ;;  %383 = vst [vmem:[%s665_s20 + $0x30] sm:$0xff] %v367_v41 }
  0xfa   : > { %378 = vst [vmem:[%s665_s20 + $0x8] sm:$0xff] %v351_v42  ;;  %384 = vst [vmem:[%s665_s20 + $0x38] sm:$0xff] %v369_v43  ;;  %v354_v45 = vpop.f32.mrb[2].mxu0  ;;  %v372_v46 = vpop.f32.mrb[2].mxu1 }
  0xfb   : > { %v355_v47 = vadd.f32 %v354_v45, %v242_v34  ;;  %v373_v48 = vadd.f32 %v372_v46, %v257_v44  ;;  %v356_v49 = vpop.f32.mrb[3].mxu0  ;;  %v374_v50 = vpop.f32.mrb[3].mxu1 }
  0xfc   : > { %v357_v51 = vadd.f32 %v356_v49, %v242_v34  ;;  %v375_v52 = vadd.f32 %v374_v50, %v257_v44 }
  0xfd   : > { %379 = vst [vmem:[%s665_s20 + $0x10] sm:$0xff] %v355_v47  ;;  %385 = vst [vmem:[%s665_s20 + $0x40] sm:$0xf] %v373_v48 }
  0xfe   : > { %380 = vst [vmem:[%s665_s20 + $0x18] sm:$0xff] %v357_v51  ;;  %386 = vst [vmem:[%s665_s20 + $0x48] sm:$0xf] %v375_v52  ;;  %v360_v53 = vpop.f32.mrb[4].mxu0 }
  0xff   : > { %v361_v54 = vadd.f32 %v360_v53, %v247_v33  ;;  %v362_v55 = vpop.f32.mrb[5].mxu0 }
 0x100   : > { %v363_v56 = vadd.f32 %v362_v55, %v247_v33 }
 0x101   : > { %381 = vst [vmem:[%s665_s20 + $0x20] sm:$0xff] %v361_v54 }
 0x102   : > { %382 = vst [vmem:[%s665_s20 + $0x28] sm:$0xff] %v363_v56 }
 0x103 PF: > { %s13_s14 = sadd.s32 1, %s562_s14   ;;  %s690_s12 = smov %s558_s13 }
 0x104   : > { %p10_p5 = scmp.ge.s32.totalorder %s13_s14, 4   ;;  %s691_s13 = smov %s693_s15 }
 0x106   :  { %12 = sbr.rel (!%p10_p5) target bundleno = 2 (0x2), region = 62 }

</bundles_post_ra>
